<compile_context>
chip_gen: v6e
topology: v6e:2x2x1
jax: 0.10.0
libtpu: 0.0.40
codegen_flags: <defaults>
</compile_context>

<pallas_src>
import functools
import math

import jax
import jax.numpy as jnp
from jax.experimental import pallas as pl
from jax.experimental.pallas import tpu as pltpu


def _round_up(x, m):
    return (x + m - 1) // m * m


def _pick_tile(dim, candidates=(512, 256, 128)):
    for c in candidates:
        if dim % c == 0:
            return c
    return dim  # full-dim block (always legal)


# --------------------------------------------------------------------------
# Tiled linear: y = x @ w.T with w in nn.Linear (out_features, in_features)
# layout. K-tiled with an f32 VMEM accumulator (P3 pattern).
# --------------------------------------------------------------------------
def _linear_kernel(x_ref, w_ref, o_ref, acc_ref):
    @pl.when(pl.program_id(2) == 0)
    def _():
        acc_ref[...] = jnp.zeros_like(acc_ref)

    acc_ref[...] += jax.lax.dot_general(
        x_ref[...], w_ref[...], (((1,), (1,)), ((), ())),
        preferred_element_type=jnp.float32)

    @pl.when(pl.program_id(2) == pl.num_programs(2) - 1)
    def _():
        o_ref[...] = acc_ref[...].astype(o_ref.dtype)


def linear_pallas(x2, w):
    """x2: (M, K); w: (N, K) -> (M, N) = x2 @ w.T (no weight transpose made)."""
    M, K = x2.shape
    N, Kw = w.shape
    assert K == Kw

    tm = min(256, _round_up(M, 8))
    m_pad = _round_up(M, tm)
    if m_pad != M:
        x2 = jnp.pad(x2, ((0, m_pad - M), (0, 0)))

    tn = _pick_tile(N)                      # lane-dense if possible, else full N
    bk = K if K <= 512 else _pick_tile(K)   # K-tiling keeps VMEM footprint small

    out = pl.pallas_call(
        _linear_kernel,
        out_shape=jax.ShapeDtypeStruct((m_pad, N), x2.dtype),
        grid_spec=pltpu.PrefetchScalarGridSpec(
            num_scalar_prefetch=0,
            grid=(m_pad // tm, N // tn, K // bk),
            in_specs=[
                pl.BlockSpec((tm, bk), lambda i, j, k: (i, k)),
                pl.BlockSpec((tn, bk), lambda i, j, k: (j, k)),
            ],
            out_specs=pl.BlockSpec((tm, tn), lambda i, j, k: (i, j)),
            scratch_shapes=[pltpu.VMEM((tm, tn), jnp.float32)],
        ),
        compiler_params=pltpu.CompilerParams(
            dimension_semantics=("parallel", "parallel", "arbitrary"),
            vmem_limit_bytes=48 * 1024 * 1024,
        ),
    )(x2, w)

    return out[:M] if m_pad != M else out


# --------------------------------------------------------------------------
# Flash attention core (non-causal, GQA: one KV stream per group, all `rep`
# query heads of the group processed against it).
#   q:  (b, q_len, n_heads, d_p)         block (block_q, rep, d_p)
#   kv: (b, kv_len, 2, n_kv, d_p)        k/v blocks (block_kv, d_p)
#   o:  (b, q_len, n_heads, d_p)         written in-place, no post-transpose
# --------------------------------------------------------------------------
def _flash_kernel(q_ref, k_ref, v_ref, o_ref, m_scr, l_scr, acc_scr,
                  *, sm_scale, rep, kv_len, block_kv, kv_padded):
    ki = pl.program_id(3)

    @pl.when(ki == 0)
    def _():
        m_scr[...] = jnp.full(m_scr.shape, -jnp.inf, dtype=m_scr.dtype)
        l_scr[...] = jnp.zeros(l_scr.shape, dtype=l_scr.dtype)
        acc_scr[...] = jnp.zeros(acc_scr.shape, dtype=acc_scr.dtype)

    q_all = q_ref[...]            # (block_q, rep, d_p), native dtype
    k = k_ref[...]                # (block_kv, d_p),     native dtype
    v = v_ref[...]                # (block_kv, d_p)

    for r in range(rep):          # static unroll over query heads of this group
        q_r = q_all[:, r, :]                                  # (block_q, d_p)
        s = jax.lax.dot_general(                              # (block_q, block_kv) f32
            q_r, k, (((1,), (1,)), ((), ())),
            preferred_element_type=jnp.float32) * sm_scale

        if kv_padded:  # static flag: mask padded kv columns (f32 scores)
            col = jax.lax.broadcasted_iota(jnp.int32, s.shape, 1) + ki * block_kv
            s = jnp.where(col < kv_len, s, -1e30)

        m_prev = m_scr[r]                                     # (block_q, 1)
        m_new = jnp.maximum(m_prev, s.max(axis=-1, keepdims=True))
        alpha = jnp.exp(m_prev - m_new)
        p = jnp.exp(s - m_new)
        l_scr[r] = alpha * l_scr[r] + p.sum(axis=-1, keepdims=True)
        acc_scr[r] = alpha * acc_scr[r] + jnp.dot(
            p.astype(v.dtype), v, preferred_element_type=jnp.float32)
        m_scr[r] = m_new

    @pl.when(ki == pl.num_programs(3) - 1)
    def _():
        for r in range(rep):
            inv = pl.reciprocal(l_scr[r], approx=True)        # EUP slot
            o_ref[:, r, :] = (acc_scr[r] * inv).astype(o_ref.dtype)


def flash_attention_pallas(q4, kv5, *, sm_scale):
    """q4: (b, q_len, n_heads, d_p); kv5: (b, kv_len, 2, n_kv, d_p)."""
    bsz, q_len, num_heads, d_p = q4.shape
    _, kv_len, two, num_kv_heads, _ = kv5.shape
    assert two == 2
    rep = num_heads // num_kv_heads

    block_q = min(128, _round_up(q_len, 8))
    q_pad = _round_up(q_len, block_q)
    if q_pad != q_len:
        q4 = jnp.pad(q4, ((0, 0), (0, q_pad - q_len), (0, 0), (0, 0)))

    block_kv = min(512, _round_up(kv_len, 8))   # large kv tiles amortize step cost
    kv_pad = _round_up(kv_len, block_kv)
    if kv_pad != kv_len:
        kv5 = jnp.pad(kv5, ((0, 0), (0, kv_pad - kv_len), (0, 0), (0, 0), (0, 0)))

    kernel = functools.partial(
        _flash_kernel, sm_scale=sm_scale, rep=rep, kv_len=kv_len,
        block_kv=block_kv, kv_padded=(kv_pad != kv_len))

    out = pl.pallas_call(
        kernel,
        out_shape=jax.ShapeDtypeStruct((bsz, q_pad, num_heads, d_p), q4.dtype),
        grid_spec=pltpu.PrefetchScalarGridSpec(
            num_scalar_prefetch=0,
            grid=(bsz, num_kv_heads, q_pad // block_q, kv_pad // block_kv),
            in_specs=[
                # q: all rep heads of kv group g, native layout
                pl.BlockSpec((None, block_q, rep, d_p),
                             lambda b, g, qi, ki: (b, qi, g, 0)),
                # K block of group g (axis2 == 0) from the fused KV array
                pl.BlockSpec((None, block_kv, None, None, d_p),
                             lambda b, g, qi, ki: (b, ki, 0, g, 0)),
                # V block of group g (axis2 == 1) from the fused KV array
                pl.BlockSpec((None, block_kv, None, None, d_p),
                             lambda b, g, qi, ki: (b, ki, 1, g, 0)),
            ],
            out_specs=pl.BlockSpec((None, block_q, rep, d_p),
                                   lambda b, g, qi, ki: (b, qi, g, 0)),
            scratch_shapes=[
                pltpu.VMEM((rep, block_q, 1), jnp.float32),    # running max
                pltpu.VMEM((rep, block_q, 1), jnp.float32),    # running denom
                pltpu.VMEM((rep, block_q, d_p), jnp.float32),  # output accumulator
            ],
        ),
        compiler_params=pltpu.CompilerParams(
            dimension_semantics=("parallel", "parallel", "parallel", "arbitrary"),
            vmem_limit_bytes=48 * 1024 * 1024,
        ),
    )(q4, kv5, kv5)   # same fused KV array passed twice (K view / V view)

    if q_pad != q_len:
        out = out[:, :q_len]
    return out


# --------------------------------------------------------------------------
# One-time weight preparation (model init, NOT per forward call)
# --------------------------------------------------------------------------
def _pick_padded_head_dim(head_dim):
    # Lane-dense head dim: pad to a multiple of 128 when overhead is small
    # (Idefics2's 96 -> 128). Tiny head dims stay as-is (full-dim last block
    # is always legal; padding 8 -> 128 would be 16x wasted bandwidth).
    if head_dim % 128 == 0:
        return head_dim
    if head_dim >= 96:
        return _round_up(head_dim, 128)
    return head_dim


def prepare_perceiver_weights(wq, wk, wv, wo, *, num_heads, num_kv_heads, head_dim):
    """Pads each head's output dim to d_p with zero rows, fuses Wk/Wv, and keeps
    everything in nn.Linear (out, in) layout (no per-call transposes)."""
    d_p = _pick_padded_head_dim(head_dim)
    hidden = wq.shape[1]

    def pad_out_heads(w, n_h):          # (n_h*head_dim, hidden) -> (n_h*d_p, hidden)
        if d_p == head_dim:
            return w
        w3 = w.reshape(n_h, head_dim, hidden)
        w3 = jnp.pad(w3, ((0, 0), (0, d_p - head_dim), (0, 0)))
        return w3.reshape(n_h * d_p, hidden)

    wq_p = pad_out_heads(wq, num_heads)
    wkv_p = jnp.concatenate(
        [pad_out_heads(wk, num_kv_heads), pad_out_heads(wv, num_kv_heads)], axis=0)

    if d_p == head_dim:
        wo_p = wo
    else:                               # zero input columns at padded positions
        out_f = wo.shape[0]
        wo3 = wo.reshape(out_f, num_heads, head_dim)
        wo3 = jnp.pad(wo3, ((0, 0), (0, 0), (0, d_p - head_dim)))
        wo_p = wo3.reshape(out_f, num_heads * d_p)

    return wq_p, wkv_p, wo_p, d_p


# --------------------------------------------------------------------------
# Full PerceiverFlashAttention forward
# --------------------------------------------------------------------------
def perceiver_flash_attention_pallas(latents, context, wq_p, wkv_p, wo_p, *,
                                     num_heads, num_kv_heads, head_dim, d_p):
    bsz, q_len, hidden = latents.shape
    hidden_states = jnp.concatenate([context, latents], axis=1)   # concat_latents_kv
    kv_len = hidden_states.shape[1]

    # Projections: weights in (out, in) layout, K/V fused (hidden read once).
    q = linear_pallas(latents.reshape(bsz * q_len, hidden), wq_p)
    kv = linear_pallas(hidden_states.reshape(bsz * kv_len, hidden), wkv_p)

    # Metadata-only reshapes; no XLA transposes around the attention kernel.
    q4 = q.reshape(bsz, q_len, num_heads, d_p)
    kv5 = kv.reshape(bsz, kv_len, 2, num_kv_heads, d_p)           # axis2: 0=K, 1=V

    attn = flash_attention_pallas(q4, kv5, sm_scale=1.0 / math.sqrt(head_dim))

    out = linear_pallas(attn.reshape(bsz * q_len, num_heads * d_p), wo_p)
    return out.reshape(bsz, q_len, wo_p.shape[0])


# --------------------------------------------------------------------------
# Pure-JAX reference (mirrors PerceiverAttention.forward math)
# --------------------------------------------------------------------------
def perceiver_attention_reference(latents, context, wq, wk, wv, wo, *,
                                  num_heads, num_kv_heads, head_dim):
    bsz, q_len, hidden = latents.shape
    hidden_states = jnp.concatenate([context, latents], axis=1)
    kv_len = hidden_states.shape[1]
    q = (latents @ wq.T).reshape(bsz, q_len, num_heads, head_dim).transpose(0, 2, 1, 3)
    k = (hidden_states @ wk.T).reshape(bsz, kv_len, num_kv_heads, head_dim).transpose(0, 2, 1, 3)
    v = (hidden_states @ wv.T).reshape(bsz, kv_len, num_kv_heads, head_dim).transpose(0, 2, 1, 3)
    rep = num_heads // num_kv_heads
    k = jnp.repeat(k, rep, axis=1)
    v = jnp.repeat(v, rep, axis=1)
    w = jnp.einsum("bhqd,bhkd->bhqk", q, k) / math.sqrt(head_dim)
    w = jax.nn.softmax(w.astype(jnp.float32), axis=-1).astype(q.dtype)
    o = jnp.einsum("bhqk,bhkd->bhqd", w, v)
    o = o.transpose(0, 2, 1, 3).reshape(bsz, q_len, num_heads * head_dim)
    return o @ wo.T


def _run_case(name, *, bsz, n_latents, seq, hidden_size, num_heads, head_dim,
              num_kv_heads):
    key = jax.random.PRNGKey(0)
    kl, kc, kq, kk, kv_, ko = jax.random.split(key, 6)
    latents = jax.random.normal(kl, (bsz, n_latents, hidden_size), jnp.float32)
    context = jax.random.normal(kc, (bsz, seq, hidden_size), jnp.float32)

    b_in = 1.0 / math.sqrt(hidden_size)
    wq = jax.random.uniform(kq, (num_heads * head_dim, hidden_size),
                            minval=-b_in, maxval=b_in, dtype=jnp.float32)
    wk = jax.random.uniform(kk, (num_kv_heads * head_dim, hidden_size),
                            minval=-b_in, maxval=b_in, dtype=jnp.float32)
    wv = jax.random.uniform(kv_, (num_kv_heads * head_dim, hidden_size),
                            minval=-b_in, maxval=b_in, dtype=jnp.float32)
    b_o = 1.0 / math.sqrt(num_heads * head_dim)
    wo = jax.random.uniform(ko, (hidden_size, num_heads * head_dim),
                            minval=-b_o, maxval=b_o, dtype=jnp.float32)

    wq_p, wkv_p, wo_p, d_p = prepare_perceiver_weights(
        wq, wk, wv, wo,
        num_heads=num_heads, num_kv_heads=num_kv_heads, head_dim=head_dim)

    out = perceiver_flash_attention_pallas(
        latents, context, wq_p, wkv_p, wo_p,
        num_heads=num_heads, num_kv_heads=num_kv_heads,
        head_dim=head_dim, d_p=d_p)
    out = jax.block_until_ready(out)

    ref = perceiver_attention_reference(
        latents, context, wq, wk, wv, wo,
        num_heads=num_heads, num_kv_heads=num_kv_heads, head_dim=head_dim)

    assert out.shape == (bsz, n_latents, hidden_size), (name, out.shape)
    err = float(jnp.max(jnp.abs(out - ref)))
    assert jnp.allclose(out, ref, atol=2e-3, rtol=2e-3), (
        f"{name}: mismatch vs reference, max abs diff={err}")


if __name__ == "__main__":
    # Case 1: small config matching the module defaults used previously
    # (bsz=2, n_latents=8, seq=16, hidden=32, 4 heads, head_dim=8, 1 kv group).
    _run_case("small", bsz=2, n_latents=8, seq=16, hidden_size=32,
              num_heads=4, head_dim=8, num_kv_heads=1)

    # Case 2: exercises the lane-dense head_dim padding path (96 -> 128),
    # like Idefics2's real head_dim, at tiny sizes.
    _run_case("padded_head_dim", bsz=1, n_latents=8, seq=16, hidden_size=64,
              num_heads=2, head_dim=96, num_kv_heads=1)

    print("KERNEL_OK")
</pallas_src>

<mosaic_0001>
module attributes {stable_mosaic.version = 11 : i64} {
  func.func @_linear_kernel(%arg0: i32, %arg1: i32, %arg2: i32, %arg3: memref<16x32xf32, #tpu.memory_space<vmem>>, %arg4: memref<32x32xf32, #tpu.memory_space<vmem>>, %arg5: memref<16x32xf32, #tpu.memory_space<vmem>>, %arg6: memref<16x32xf32, #tpu.memory_space<vmem>>) attributes {dimension_semantics = [#tpu.dimension_semantics<parallel>, #tpu.dimension_semantics<parallel>, #tpu.dimension_semantics<arbitrary>], iteration_bounds = array<i64: 1, 1, 1>, scalar_prefetch = 0 : i64, scratch_operands = 1 : i64, tpu.core_type = #tpu.core_type<tc>, window_params = [{transform_indices = @transform_0, window_bounds = array<i64: 16, 32>}, {transform_indices = @transform_1, window_bounds = array<i64: 32, 32>}, {transform_indices = @transform_2, window_bounds = array<i64: 16, 32>}]} {
    %c0_i32 = arith.constant 0 : i32
    %0 = arith.cmpi eq, %arg2, %c0_i32 : i32
    %1 = arith.extui %0 : i1 to i32
    %c0_i32_0 = arith.constant 0 : i32
    %2 = arith.cmpi ne, %1, %c0_i32_0 : i32
    scf.if %2 {
      %cst_10 = arith.constant 0.000000e+00 : f32
      %12 = vector.broadcast %cst_10 : f32 to vector<16x32xf32>
      %c0_11 = arith.constant 0 : index
      %c0_12 = arith.constant 0 : index
      %13 = vector.load %arg6[%c0_11, %c0_12] : memref<16x32xf32, #tpu.memory_space<vmem>>, vector<16x32xf32>
      tpu.vector_store %arg6[%c0_11, %c0_12], %12 {strides = array<i32>} : memref<16x32xf32, #tpu.memory_space<vmem>>, vector<16x32xf32>,
    } else {
    }
    %c0 = arith.constant 0 : index
    %c0_1 = arith.constant 0 : index
    %3 = vector.load %arg6[%c0, %c0_1] : memref<16x32xf32, #tpu.memory_space<vmem>>, vector<16x32xf32>
    %c0_2 = arith.constant 0 : index
    %c0_3 = arith.constant 0 : index
    %4 = vector.load %arg3[%c0_2, %c0_3] : memref<16x32xf32, #tpu.memory_space<vmem>>, vector<16x32xf32>
    %c0_4 = arith.constant 0 : index
    %c0_5 = arith.constant 0 : index
    %5 = vector.load %arg4[%c0_4, %c0_5] : memref<32x32xf32, #tpu.memory_space<vmem>>, vector<32x32xf32>
    %cst = arith.constant dense<0.000000e+00> : vector<16x32xf32>
    %6 = tpu.matmul %4, %5, %cst {dimension_numbers = #tpu.dot_dimension_numbers<[1], [1], [0], [0], [0, 0, 1, 0], [], []>} : vector<16x32xf32>, vector<32x32xf32>, vector<16x32xf32> -> vector<16x32xf32>
    %7 = arith.addf %3, %6 : vector<16x32xf32>
    %c0_6 = arith.constant 0 : index
    %c0_7 = arith.constant 0 : index
    %8 = vector.load %arg6[%c0_6, %c0_7] : memref<16x32xf32, #tpu.memory_space<vmem>>, vector<16x32xf32>
    tpu.vector_store %arg6[%c0_6, %c0_7], %7 {strides = array<i32>} : memref<16x32xf32, #tpu.memory_space<vmem>>, vector<16x32xf32>,
    %c0_i32_8 = arith.constant 0 : i32
    %9 = arith.cmpi eq, %arg2, %c0_i32_8 : i32
    %10 = arith.extui %9 : i1 to i32
    %c0_i32_9 = arith.constant 0 : i32
    %11 = arith.cmpi ne, %10, %c0_i32_9 : i32
    scf.if %11 {
      %c0_10 = arith.constant 0 : index
      %c0_11 = arith.constant 0 : index
      %12 = vector.load %arg6[%c0_10, %c0_11] : memref<16x32xf32, #tpu.memory_space<vmem>>, vector<16x32xf32>
      %c0_12 = arith.constant 0 : index
      %c0_13 = arith.constant 0 : index
      %13 = vector.load %arg5[%c0_12, %c0_13] : memref<16x32xf32, #tpu.memory_space<vmem>>, vector<16x32xf32>
      tpu.vector_store %arg5[%c0_12, %c0_13], %12 {strides = array<i32>} : memref<16x32xf32, #tpu.memory_space<vmem>>, vector<16x32xf32>,
    } else {
    }
    return
  }
  func.func @transform_0(%arg0: i32, %arg1: i32, %arg2: i32) -> (i32, i32) {
    %c0_i32 = arith.constant 0 : i32
    return %arg0, %arg2 : i32, i32
  }
  func.func @transform_1(%arg0: i32, %arg1: i32, %arg2: i32) -> (i32, i32) {
    %c0_i32 = arith.constant 0 : i32
    return %arg1, %arg2 : i32, i32
  }
  func.func @transform_2(%arg0: i32, %arg1: i32, %arg2: i32) -> (i32, i32) {
    %c0_i32 = arith.constant 0 : i32
    return %arg0, %arg1 : i32, i32
  }
}

</mosaic_0001>

<bundles_post_ra>
// kernel: tpu_custom_call.1
= control target key start
LH: loop header
LB: loop body
LE: loop exit
PB: predicated region body
PF: predicated region fallthrough
CT: control target
= control target key end

     0   :  { %7 = vsyncpa [#allocation4], 0  ;;  %s328_s0 = inlined_call_operand.hbm [shape: f32[16,32], index: 0, kind: input, shape index: {}]   ;;  %s329_s1 = inlined_call_operand.hbm [shape: f32[32,32], index: 1, kind: input, shape index: {}]   ;;  %s330_s2 = inlined_call_operand.hbm [shape: f32[16,32], index: 2, kind: output, shape index: {}]  }
   0x1   :  { %8 = vsyncpa [#allocation7], 0 }
   0x2   :  { %9 = vsyncpa [#allocation5], 0  ;;  %s273_s9 = smov [#allocation3]  }
   0x3   :  { %s15_s10 = sshll.u32 %s273_s9, 4  ;;  %s16_s10 = int_to_ptr.vmem [resolvable:$true] %s15_s10 }
   0x4   :  { %s215_s11 = scalar_lea.vmem %s16_s10, 256  ;;  %p220_p1 = scmp.lt.s32.totalorder %s16_s10, %s16_s10 }
   0x5   :  { %p216_p0 = scmp.ne.s32.totalorder %s16_s10, %s215_s11  ;;  %p221_p2 = scmp.lt.s32.totalorder %s215_s11, %s215_s11 }
   0x7   :  { %p222_p3 = por %p221_p2, %p220_p1 }
   0x9   :  { %p223_p4 = pnand %p222_p3, %p216_p0 }
   0xb   :  { %226 = shalt.err (!%p223_p4)
}
   0xc   :  { %s274_s12 = smov 128   ;;  %s275_s13 = smov 8  }
   0xd   :  { %21 = dma.hbm_to_vmem [thread:$0]  %s328_s0, 256, %s16_s10, [#allocation4], %s274_s12, %s274_s12, %s275_s13  }
   0xe   :  { %s276_s16 = smov [#allocation6]  }
   0xf   :  { %s27_s17 = sshll.u32 %s276_s16, 4  ;;  %s28_s17 = int_to_ptr.vmem [resolvable:$true] %s27_s17 }
  0x10   :  { %s235_s18 = scalar_lea.vmem %s28_s17, 512  ;;  %p240_p6 = scmp.lt.s32.totalorder %s28_s17, %s28_s17 }
  0x11   :  { %p236_p5 = scmp.ne.s32.totalorder %s28_s17, %s235_s18  ;;  %p241_p7 = scmp.lt.s32.totalorder %s235_s18, %s235_s18 }
  0x13   :  { %p242_p8 = por %p241_p7, %p240_p6 }
  0x15   :  { %p243_p9 = pnand %p242_p8, %p236_p5 }
  0x17   :  { %246 = shalt.err (!%p243_p9)
}
  0x18   :  { %33 = dma.hbm_to_vmem [thread:$0]  %s329_s1, 512, %s28_s17, [#allocation7], %s274_s12, %s274_s12, %s275_s13  }
  0x19   :  { %267 = dma.done.wait [#allocation4], 256  }
  0x1a   :  { %268 = vsyncadd [#allocation4], 4294967040 }
  0x1b   :  { %269 = dma.done.wait [#allocation7], 512  }
  0x1c   :  { %270 = vsyncadd [#allocation7], 4294966784  ;;  %vm44_vm0 = vcmask 261120   ;;  %v277_v0 = vmov 0.0   ;;  %v54_v1 = vld [vmem:[#allocation6 + $0x18] sm:$0xff]  ;;  %v53_v2 = vld [vmem:[#allocation6 + $0x10] sm:$0xff] }
  0x1d   :  { %46 = vst.msk [vmem:[#allocation2 + $0x8] sm:$0xff] %vm44_vm0, %v277_v0  ;;  %45 = vst.msk [vmem:[#allocation2] sm:$0xff] %vm44_vm0, %v277_v0  ;;  %190 = vmatprep.subr.msk.mxu0 %vm44_vm0, %v54_v1  ;;  %v49_v3 = vld [vmem:[#allocation3] sm:$0xff]  ;;  %v52_v4 = vld [vmem:[#allocation6 + $0x8] sm:$0xff]  ;;  %s278_s0 = smov [#allocation8]  }
  0x1e   :  { %191 = vmatpush3.xpose.msk.msra.mxu0 %vm44_vm0, %v54_v1  ;;  %198 = vmatprep.mubr.msk.f32.mxu0 %vm44_vm0, %v49_v3  ;;  %v51_v5 = vld [vmem:[#allocation6] sm:$0xff]  ;;  %v50_v6 = vld [vmem:[#allocation3 + $0x8] sm:$0xff]  ;;  %s165_s1 = sshll.u32 %s278_s0, 4  ;;  %s166_s1 = int_to_ptr.vmem [resolvable:$true] %s165_s1 }
  0x1f   :  { %192 = vmatprep.subr.msk.mxu0 %vm44_vm0, %v53_v2  ;;  %s247_s21 = scalar_lea.vmem %s166_s1, 256  ;;  %p252_p11 = scmp.lt.s32.totalorder %s166_s1, %s166_s1 }
  0x20   :  { %p248_p10 = scmp.ne.s32.totalorder %s166_s1, %s247_s21  ;;  %p253_p12 = scmp.lt.s32.totalorder %s247_s21, %s247_s21 }
  0x22   :  { %193 = vmatpush3.xpose.msk.msra.mxu0 %vm44_vm0, %v53_v2  ;;  %p254_p13 = por %p253_p12, %p252_p11 }
  0x23   :  { %194 = vmatprep.subr.msk.mxu0 %vm44_vm0, %v52_v4 }
  0x24   :  { %v48_v7 = vld [vmem:[#allocation2 + $0x8] sm:$0xff]  ;;  %v47_v9 = vld [vmem:[#allocation2] sm:$0xff]  ;;  %p255_p0 = pnand %p254_p13, %p248_p10 }
  0x26   :  { %195 = vmatpush3.xpose.msk.msra.mxu0 %vm44_vm0, %v52_v4 }
  0x27   :  { %196 = vmatprep.subr.msk.mxu0 %vm44_vm0, %v51_v5 }
  0x2a   :  { %197 = vmatpush3.xpose.msk.msra.mxu0 %vm44_vm0, %v51_v5 }
  0x2d   :  { %199 = vmatmul.mubr.msk.f32.vlgmr.msra.gmra.mxu0 %vm44_vm0, %v50_v6 }
  0xed   :  { %v200_v8 = vpop.f32.mrf.mxu0 }
  0xee   :  { %v150_v10 = vadd.f32 %v200_v8, %v48_v7 }
  0xef   :  { %v140_v11 = vpop.f32.mrf.mxu0 }
  0xf0   :  { %152 = vst.msk [vmem:[#allocation2 + $0x8] sm:$0xff] %vm44_vm0, %v150_v10  ;;  %v149_v12 = vadd.f32 %v140_v11, %v47_v9 }
  0xf2   :  { %151 = vst.msk [vmem:[#allocation2] sm:$0xff] %vm44_vm0, %v149_v12 }
  0xf7   :  { %v157_v13 = vld [vmem:[#allocation2 + $0x8] sm:$0xff] }
  0xf8   :  { %159 = vst.msk [vmem:[#allocation8 + $0x8] sm:$0xff] %vm44_vm0, %v157_v13 }
  0xf9   :  { %v156_v14 = vld [vmem:[#allocation2] sm:$0xff] }
  0xfa   :  { %158 = vst.msk [vmem:[#allocation8] sm:$0xff] %vm44_vm0, %v156_v14 }
  0xfb   :  { %258 = shalt.err (!%p255_p0)
}
  0xfc   :  { %171 = dma.vmem_to_hbm [thread:$0]  %s166_s1, 256, %s330_s2, [#allocation5], %s274_s12, %s274_s12, %s275_s13  }
  0xfd   :  { %271 = dma.done.wait [#allocation5], 256  }
  0xfe   :  { %272 = vsyncadd [#allocation5], 4294967040 }
  0xff   :  { %175 = vsyncpa [#allocation4], 1 }
 0x100   :  { %176 = vsyncpa [#allocation7], 1 }
 0x101   :  { %177 = vsyncpa [#allocation5], 1 }

</bundles_post_ra>
